<compile_context>
chip_gen: v6e
topology: v6e:2x2x1
jax: 0.10.0
libtpu: 0.0.40
codegen_flags: <defaults>
</compile_context>

<pallas_src>
import functools
import numpy as np
import jax
import jax.numpy as jnp
from jax import lax
from jax.experimental import pallas as pl
from jax.experimental.pallas import tpu as pltpu

LANE = 128


def _ceil_div(a, b):
    return -(-a // b)


def _round_up(a, b):
    return _ceil_div(a, b) * b


def _raymarch_kernel(d_ref, f_ref, out_fo_ref, out_w_ref, *,
                     n_pts, feat_dim, shift, eps, threshold_mode, use_fori):
    N, F = n_pts, feat_dim
    TRS, L = d_ref.shape[1], d_ref.shape[2]
    f32 = jnp.float32
    one_plus_eps = np.float32(1.0 + eps)
    w_dtype = out_w_ref.dtype
    fo_dtype = out_fo_ref.dtype

    def load_d(i):
        d_i = d_ref[i].astype(f32)                       # (TRS, 128), f32 math
        if threshold_mode:
            d_i = jnp.where(d_i > 0.05, jnp.ones_like(d_i), jnp.zeros_like(d_i))
        return d_i

    ones = jnp.ones((TRS, L), f32)

    if not use_fori:
        # ---------- fused forward pass: shifted cumprod + weights + features
        # ---------- + opacity (opacity product fused into the same loop)
        run = ones                      # prod_{j<=i} (1+eps-d_j)
        op_run = ones                   # prod_{j<=i} (1-d_j)
        hist = [ones] * shift           # delay line -> shifted cumprod
        acc = [jnp.zeros((TRS, L), f32) for _ in range(F)]
        for i in range(N):
            d_i = load_d(i)
            x_i = one_plus_eps - d_i
            run = run * x_i
            hist.append(run)
            a_i = hist.pop(0)           # prod_{j <= i-shift} x_j (1 if i<shift)
            w_i = d_i * a_i
            out_w_ref[i] = w_i.astype(w_dtype)          # lane-dense row store
            op_run = op_run * (1.0 - d_i)
            for f in range(F):
                acc[f] = acc[f] + w_i * f_ref[i * F + f].astype(f32)
        for f in range(F):
            out_fo_ref[f] = acc[f].astype(fo_dtype)
        out_fo_ref[F] = (1.0 - op_run).astype(fo_dtype)

        # ---------- backward pass: weights2[i] = d_i * prod_{j >= i+shift} x_j
        run2 = ones
        hist2 = [ones] * shift
        for i in range(N - 1, -1, -1):
            d_i = load_d(i)
            x_i = one_plus_eps - d_i
            run2 = run2 * x_i
            hist2.append(run2)
            a2_i = hist2.pop(0)
            out_w_ref[N + i] = (d_i * a2_i).astype(w_dtype)
    else:
        # Large N (shift == 1): fori_loop bounds trace size and vreg live ranges.
        def fwd(i, carry):
            run, op_run, acc = carry
            d_i = load_d(i)
            x_i = one_plus_eps - d_i
            w_i = d_i * run                               # shift == 1
            out_w_ref[i] = w_i.astype(w_dtype)
            feat_i = f_ref[pl.ds(i * F, F)].astype(f32)   # (F, TRS, 128)
            acc = acc + w_i[None] * feat_i
            return run * x_i, op_run * (1.0 - d_i), acc

        run, op_run, acc = lax.fori_loop(
            0, N, fwd, (ones, ones, jnp.zeros((F, TRS, L), f32)))
        out_fo_ref[0:F] = acc.astype(fo_dtype)
        out_fo_ref[F] = (1.0 - op_run).astype(fo_dtype)

        def bwd(k, run2):
            i = N - 1 - k
            d_i = load_d(i)
            out_w_ref[N + i] = (d_i * run2).astype(w_dtype)  # prod_{j>i} x_j
            return run2 * (one_plus_eps - d_i)

        lax.fori_loop(0, N, bwd, ones)


def emission_absorption_raymarcher(rays_densities, rays_features,
                                   surface_thickness: int = 1,
                                   threshold_mode: bool = False,
                                   eps: float = 1e-10,
                                   tile_ray_sublanes: int = 32):
    """Pallas TPU implementation of EmissionAbsorptionRaymarcherStratified.forward.

    rays_densities: (..., N, 1)  values in [0, 1]
    rays_features : (..., N, F)
    returns: (features_opacities (..., F+1), weights_cat (..., 2*N))
    """
    assert rays_densities.shape[-1] == 1
    batch = rays_densities.shape[:-2]
    N = rays_densities.shape[-2]
    F = rays_features.shape[-1]
    assert rays_features.shape[:-1] == rays_densities.shape[:-1]
    assert 0 <= surface_thickness <= N

    R = int(np.prod(batch)) if batch else 1
    dtype = rays_densities.dtype

    # ---- pick the ray tile: (TRS sublanes) x (128 lanes) rays per grid step,
    #      sized against the per-generation VMEM budget (double-buffered blocks).
    rb_min = _ceil_div(R, LANE)
    try:
        vmem_cap = int(pltpu.get_tpu_info().vmem_capacity_bytes)
    except Exception:
        vmem_cap = 64 * 1024 * 1024          # v7x-safe fallback
    itemsize = np.dtype(dtype).itemsize
    rows_total = N + N * F + (F + 1) + 2 * N
    bytes_per_sublane = rows_total * LANE * itemsize
    budget = max(8 * 1024 * 1024, vmem_cap // 3)
    trs_cap = max(1, budget // (2 * bytes_per_sublane))
    TRS = min(tile_ray_sublanes, trs_cap)
    if rb_min <= TRS:
        TRS = rb_min                          # single ray-block (tiny problems)
        Rb = rb_min
    else:
        TRS = max(8, (TRS // 8) * 8)
        Rb = _round_up(rb_min, TRS)           # pad rays up instead of shrinking TRS
    Rp = Rb * LANE
    grid = (Rb // TRS,)

    block_bytes = bytes_per_sublane * TRS
    vmem_limit = int(min(max(32 * 1024 * 1024, 2 * block_bytes + 8 * 1024 * 1024),
                         max(32 * 1024 * 1024, vmem_cap - 16 * 1024 * 1024)))

    # ---- lane-dense, transposed layout: rays on the (sublane, lane) minor axes
    d_t = rays_densities.reshape(R, N).T                                # (N, R)
    f_t = jnp.transpose(rays_features.reshape(R, N, F), (1, 2, 0))      # (N, F, R)
    f_t = f_t.reshape(N * F, R)
    pad = Rp - R
    if pad:
        d_t = jnp.pad(d_t, ((0, 0), (0, pad)))
        f_t = jnp.pad(f_t, ((0, 0), (0, pad)))
    d3 = d_t.reshape(N, Rb, LANE)
    f3 = f_t.reshape(N * F, Rb, LANE)

    use_fori = (N > 32) and (surface_thickness == 1)
    # TODO(synk): large N with surface_thickness != 1 still uses the fully
    # unrolled path; a scratch-based shifted cumprod would cover that with
    # fori_loop as well.

    kernel = functools.partial(_raymarch_kernel,
                               n_pts=N, feat_dim=F,
                               shift=surface_thickness, eps=eps,
                               threshold_mode=threshold_mode,
                               use_fori=use_fori)

    out_fo, out_w = pl.pallas_call(
        kernel,
        out_shape=(jax.ShapeDtypeStruct((F + 1, Rb, LANE), dtype),
                   jax.ShapeDtypeStruct((2 * N, Rb, LANE), dtype)),
        grid=grid,
        in_specs=[pl.BlockSpec((N, TRS, LANE), lambda i: (0, i, 0)),
                  pl.BlockSpec((N * F, TRS, LANE), lambda i: (0, i, 0))],
        out_specs=(pl.BlockSpec((F + 1, TRS, LANE), lambda i: (0, i, 0)),
                   pl.BlockSpec((2 * N, TRS, LANE), lambda i: (0, i, 0))),
        compiler_params=pltpu.CompilerParams(
            dimension_semantics=("parallel",),
            vmem_limit_bytes=vmem_limit),
    )(d3, f3)

    fo = out_fo.reshape(F + 1, Rp)[:, :R].T.reshape(*batch, F + 1)
    w = out_w.reshape(2 * N, Rp)[:, :R].T.reshape(*batch, 2 * N)
    return fo, w


# ---------------- pure-JAX reference (mirrors the torch code) ----------------
def _shifted_cumprod_ref(x, shift):
    xc = jnp.cumprod(x, axis=-1)
    ones = jnp.ones_like(xc[..., :shift])
    return jnp.concatenate([ones, xc[..., :x.shape[-1] - shift]], axis=-1)


def _reference(rays_densities, rays_features, surface_thickness=1, eps=1e-10):
    d = rays_densities[..., 0]
    absorption = _shifted_cumprod_ref(1.0 + eps - d, surface_thickness)
    weights = d * absorption
    features = jnp.sum(weights[..., None] * rays_features, axis=-2)
    opacities = 1.0 - jnp.prod(1.0 - d, axis=-1, keepdims=True)
    absorption2 = _shifted_cumprod_ref(1.0 + eps - jnp.flip(d, axis=-1),
                                       surface_thickness)
    weights2 = d * jnp.flip(absorption2, axis=-1)
    return (jnp.concatenate([features, opacities], axis=-1),
            jnp.concatenate([weights, weights2], axis=-1))


def _check(shape_batch, N, F, key, surface_thickness=1):
    k1, k2 = jax.random.split(key)
    dens = jax.random.uniform(k1, shape_batch + (N, 1), dtype=jnp.float32)
    feat = jax.random.normal(k2, shape_batch + (N, F), dtype=jnp.float32)
    fo, w = emission_absorption_raymarcher(dens, feat,
                                           surface_thickness=surface_thickness)
    jax.block_until_ready((fo, w))
    fo_ref, w_ref = _reference(dens, feat, surface_thickness=surface_thickness)
    np.testing.assert_allclose(np.asarray(fo), np.asarray(fo_ref),
                               rtol=1e-5, atol=1e-5)
    np.testing.assert_allclose(np.asarray(w), np.asarray(w_ref),
                               rtol=1e-5, atol=1e-5)
    assert fo.shape == shape_batch + (F + 1,)
    assert w.shape == shape_batch + (2 * N,)


if __name__ == "__main__":
    key = jax.random.PRNGKey(0)
    k1, k2 = jax.random.split(key)

    # small case: batch=2, 8x8 rays per image, 8 points per ray, feature_dim=4
    _check((2, 8, 8), 8, 4, k1, surface_thickness=1)

    # modest multi-block case: exercises ray padding (R not a multiple of 128),
    # the 32x128-ray tiles and a grid of 2 parallel blocks.
    _check((1, 72, 90), 8, 4, k2, surface_thickness=1)

    print("KERNEL_OK")
</pallas_src>

<mosaic_0001>
module attributes {stable_mosaic.version = 11 : i64} {
  func.func @_raymarch_kernel(%arg0: i32, %arg1: memref<8x1x128xf32, #tpu.memory_space<vmem>>, %arg2: memref<32x1x128xf32, #tpu.memory_space<vmem>>, %arg3: memref<5x1x128xf32, #tpu.memory_space<vmem>>, %arg4: memref<16x1x128xf32, #tpu.memory_space<vmem>>) attributes {dimension_semantics = [#tpu.dimension_semantics<parallel>], iteration_bounds = array<i64: 1>, scalar_prefetch = 0 : i64, scratch_operands = 0 : i64, tpu.core_type = #tpu.core_type<tc>, window_params = [{transform_indices = @transform_0, window_bounds = array<i64: 8, 1, 128>}, {transform_indices = @transform_1, window_bounds = array<i64: 32, 1, 128>}, {transform_indices = @transform_2, window_bounds = array<i64: 5, 1, 128>}, {transform_indices = @transform_3, window_bounds = array<i64: 16, 1, 128>}]} {
    %cst = arith.constant 1.000000e+00 : f32
    %0 = vector.broadcast %cst : f32 to vector<1x128xf32>
    %cst_0 = arith.constant 0.000000e+00 : f32
    %1 = vector.broadcast %cst_0 : f32 to vector<1x128xf32>
    %cst_1 = arith.constant 0.000000e+00 : f32
    %2 = vector.broadcast %cst_1 : f32 to vector<1x128xf32>
    %cst_2 = arith.constant 0.000000e+00 : f32
    %3 = vector.broadcast %cst_2 : f32 to vector<1x128xf32>
    %cst_3 = arith.constant 0.000000e+00 : f32
    %4 = vector.broadcast %cst_3 : f32 to vector<1x128xf32>
    %c0 = arith.constant 0 : index
    %c0_4 = arith.constant 0 : index
    %c0_5 = arith.constant 0 : index
    %5 = vector.load %arg1[%c0, %c0_4, %c0_5] : memref<8x1x128xf32, #tpu.memory_space<vmem>>, vector<1x1x128xf32>
    %6 = vector.shape_cast %5 : vector<1x1x128xf32> to vector<1x128xf32>
    %cst_6 = arith.constant 1.000000e+00 : f32
    %7 = vector.broadcast %cst_6 : f32 to vector<1x128xf32>
    %8 = arith.subf %7, %6 : vector<1x128xf32>
    %9 = arith.mulf %0, %8 : vector<1x128xf32>
    %10 = arith.mulf %6, %0 : vector<1x128xf32>
    %c0_7 = arith.constant 0 : index
    %c0_8 = arith.constant 0 : index
    %c0_9 = arith.constant 0 : index
    %11 = vector.load %arg4[%c0_7, %c0_8, %c0_9] : memref<16x1x128xf32, #tpu.memory_space<vmem>>, vector<1x1x128xf32>
    %12 = vector.shape_cast %11 : vector<1x1x128xf32> to vector<1x128xf32>
    %13 = vector.shape_cast %10 : vector<1x128xf32> to vector<1x1x128xf32>
    tpu.vector_store %arg4[%c0_7, %c0_8, %c0_9], %13 {strides = array<i32>} : memref<16x1x128xf32, #tpu.memory_space<vmem>>, vector<1x1x128xf32>,
    %cst_10 = arith.constant 1.000000e+00 : f32
    %14 = vector.broadcast %cst_10 : f32 to vector<1x128xf32>
    %15 = arith.subf %14, %6 : vector<1x128xf32>
    %16 = arith.mulf %0, %15 : vector<1x128xf32>
    %c0_11 = arith.constant 0 : index
    %c0_12 = arith.constant 0 : index
    %c0_13 = arith.constant 0 : index
    %17 = vector.load %arg2[%c0_11, %c0_12, %c0_13] : memref<32x1x128xf32, #tpu.memory_space<vmem>>, vector<1x1x128xf32>
    %18 = vector.shape_cast %17 : vector<1x1x128xf32> to vector<1x128xf32>
    %19 = arith.mulf %10, %18 : vector<1x128xf32>
    %20 = arith.addf %1, %19 : vector<1x128xf32>
    %c1 = arith.constant 1 : index
    %c0_14 = arith.constant 0 : index
    %c0_15 = arith.constant 0 : index
    %21 = vector.load %arg2[%c1, %c0_14, %c0_15] : memref<32x1x128xf32, #tpu.memory_space<vmem>>, vector<1x1x128xf32>
    %22 = vector.shape_cast %21 : vector<1x1x128xf32> to vector<1x128xf32>
    %23 = arith.mulf %10, %22 : vector<1x128xf32>
    %24 = arith.addf %2, %23 : vector<1x128xf32>
    %c2 = arith.constant 2 : index
    %c0_16 = arith.constant 0 : index
    %c0_17 = arith.constant 0 : index
    %25 = vector.load %arg2[%c2, %c0_16, %c0_17] : memref<32x1x128xf32, #tpu.memory_space<vmem>>, vector<1x1x128xf32>
    %26 = vector.shape_cast %25 : vector<1x1x128xf32> to vector<1x128xf32>
    %27 = arith.mulf %10, %26 : vector<1x128xf32>
    %28 = arith.addf %3, %27 : vector<1x128xf32>
    %c3 = arith.constant 3 : index
    %c0_18 = arith.constant 0 : index
    %c0_19 = arith.constant 0 : index
    %29 = vector.load %arg2[%c3, %c0_18, %c0_19] : memref<32x1x128xf32, #tpu.memory_space<vmem>>, vector<1x1x128xf32>
    %30 = vector.shape_cast %29 : vector<1x1x128xf32> to vector<1x128xf32>
    %31 = arith.mulf %10, %30 : vector<1x128xf32>
    %32 = arith.addf %4, %31 : vector<1x128xf32>
    %c1_20 = arith.constant 1 : index
    %c0_21 = arith.constant 0 : index
    %c0_22 = arith.constant 0 : index
    %33 = vector.load %arg1[%c1_20, %c0_21, %c0_22] : memref<8x1x128xf32, #tpu.memory_space<vmem>>, vector<1x1x128xf32>
    %34 = vector.shape_cast %33 : vector<1x1x128xf32> to vector<1x128xf32>
    %cst_23 = arith.constant 1.000000e+00 : f32
    %35 = vector.broadcast %cst_23 : f32 to vector<1x128xf32>
    %36 = arith.subf %35, %34 : vector<1x128xf32>
    %37 = arith.mulf %9, %36 : vector<1x128xf32>
    %38 = arith.mulf %34, %9 : vector<1x128xf32>
    %c1_24 = arith.constant 1 : index
    %c0_25 = arith.constant 0 : index
    %c0_26 = arith.constant 0 : index
    %39 = vector.load %arg4[%c1_24, %c0_25, %c0_26] : memref<16x1x128xf32, #tpu.memory_space<vmem>>, vector<1x1x128xf32>
    %40 = vector.shape_cast %39 : vector<1x1x128xf32> to vector<1x128xf32>
    %41 = vector.shape_cast %38 : vector<1x128xf32> to vector<1x1x128xf32>
    tpu.vector_store %arg4[%c1_24, %c0_25, %c0_26], %41 {strides = array<i32>} : memref<16x1x128xf32, #tpu.memory_space<vmem>>, vector<1x1x128xf32>,
    %cst_27 = arith.constant 1.000000e+00 : f32
    %42 = vector.broadcast %cst_27 : f32 to vector<1x128xf32>
    %43 = arith.subf %42, %34 : vector<1x128xf32>
    %44 = arith.mulf %16, %43 : vector<1x128xf32>
    %c4 = arith.constant 4 : index
    %c0_28 = arith.constant 0 : index
    %c0_29 = arith.constant 0 : index
    %45 = vector.load %arg2[%c4, %c0_28, %c0_29] : memref<32x1x128xf32, #tpu.memory_space<vmem>>, vector<1x1x128xf32>
    %46 = vector.shape_cast %45 : vector<1x1x128xf32> to vector<1x128xf32>
    %47 = arith.mulf %38, %46 : vector<1x128xf32>
    %48 = arith.addf %20, %47 : vector<1x128xf32>
    %c5 = arith.constant 5 : index
    %c0_30 = arith.constant 0 : index
    %c0_31 = arith.constant 0 : index
    %49 = vector.load %arg2[%c5, %c0_30, %c0_31] : memref<32x1x128xf32, #tpu.memory_space<vmem>>, vector<1x1x128xf32>
    %50 = vector.shape_cast %49 : vector<1x1x128xf32> to vector<1x128xf32>
    %51 = arith.mulf %38, %50 : vector<1x128xf32>
    %52 = arith.addf %24, %51 : vector<1x128xf32>
    %c6 = arith.constant 6 : index
    %c0_32 = arith.constant 0 : index
    %c0_33 = arith.constant 0 : index
    %53 = vector.load %arg2[%c6, %c0_32, %c0_33] : memref<32x1x128xf32, #tpu.memory_space<vmem>>, vector<1x1x128xf32>
    %54 = vector.shape_cast %53 : vector<1x1x128xf32> to vector<1x128xf32>
    %55 = arith.mulf %38, %54 : vector<1x128xf32>
    %56 = arith.addf %28, %55 : vector<1x128xf32>
    %c7 = arith.constant 7 : index
    %c0_34 = arith.constant 0 : index
    %c0_35 = arith.constant 0 : index
    %57 = vector.load %arg2[%c7, %c0_34, %c0_35] : memref<32x1x128xf32, #tpu.memory_space<vmem>>, vector<1x1x128xf32>
    %58 = vector.shape_cast %57 : vector<1x1x128xf32> to vector<1x128xf32>
    %59 = arith.mulf %38, %58 : vector<1x128xf32>
    %60 = arith.addf %32, %59 : vector<1x128xf32>
    %c2_36 = arith.constant 2 : index
    %c0_37 = arith.constant 0 : index
    %c0_38 = arith.constant 0 : index
    %61 = vector.load %arg1[%c2_36, %c0_37, %c0_38] : memref<8x1x128xf32, #tpu.memory_space<vmem>>, vector<1x1x128xf32>
    %62 = vector.shape_cast %61 : vector<1x1x128xf32> to vector<1x128xf32>
    %cst_39 = arith.constant 1.000000e+00 : f32
    %63 = vector.broadcast %cst_39 : f32 to vector<1x128xf32>
    %64 = arith.subf %63, %62 : vector<1x128xf32>
    %65 = arith.mulf %37, %64 : vector<1x128xf32>
    %66 = arith.mulf %62, %37 : vector<1x128xf32>
    %c2_40 = arith.constant 2 : index
    %c0_41 = arith.constant 0 : index
    %c0_42 = arith.constant 0 : index
    %67 = vector.load %arg4[%c2_40, %c0_41, %c0_42] : memref<16x1x128xf32, #tpu.memory_space<vmem>>, vector<1x1x128xf32>
    %68 = vector.shape_cast %67 : vector<1x1x128xf32> to vector<1x128xf32>
    %69 = vector.shape_cast %66 : vector<1x128xf32> to vector<1x1x128xf32>
    tpu.vector_store %arg4[%c2_40, %c0_41, %c0_42], %69 {strides = array<i32>} : memref<16x1x128xf32, #tpu.memory_space<vmem>>, vector<1x1x128xf32>,
    %cst_43 = arith.constant 1.000000e+00 : f32
    %70 = vector.broadcast %cst_43 : f32 to vector<1x128xf32>
    %71 = arith.subf %70, %62 : vector<1x128xf32>
    %72 = arith.mulf %44, %71 : vector<1x128xf32>
    %c8 = arith.constant 8 : index
    %c0_44 = arith.constant 0 : index
    %c0_45 = arith.constant 0 : index
    %73 = vector.load %arg2[%c8, %c0_44, %c0_45] : memref<32x1x128xf32, #tpu.memory_space<vmem>>, vector<1x1x128xf32>
    %74 = vector.shape_cast %73 : vector<1x1x128xf32> to vector<1x128xf32>
    %75 = arith.mulf %66, %74 : vector<1x128xf32>
    %76 = arith.addf %48, %75 : vector<1x128xf32>
    %c9 = arith.constant 9 : index
    %c0_46 = arith.constant 0 : index
    %c0_47 = arith.constant 0 : index
    %77 = vector.load %arg2[%c9, %c0_46, %c0_47] : memref<32x1x128xf32, #tpu.memory_space<vmem>>, vector<1x1x128xf32>
    %78 = vector.shape_cast %77 : vector<1x1x128xf32> to vector<1x128xf32>
    %79 = arith.mulf %66, %78 : vector<1x128xf32>
    %80 = arith.addf %52, %79 : vector<1x128xf32>
    %c10 = arith.constant 10 : index
    %c0_48 = arith.constant 0 : index
    %c0_49 = arith.constant 0 : index
    %81 = vector.load %arg2[%c10, %c0_48, %c0_49] : memref<32x1x128xf32, #tpu.memory_space<vmem>>, vector<1x1x128xf32>
    %82 = vector.shape_cast %81 : vector<1x1x128xf32> to vector<1x128xf32>
    %83 = arith.mulf %66, %82 : vector<1x128xf32>
    %84 = arith.addf %56, %83 : vector<1x128xf32>
    %c11 = arith.constant 11 : index
    %c0_50 = arith.constant 0 : index
    %c0_51 = arith.constant 0 : index
    %85 = vector.load %arg2[%c11, %c0_50, %c0_51] : memref<32x1x128xf32, #tpu.memory_space<vmem>>, vector<1x1x128xf32>
    %86 = vector.shape_cast %85 : vector<1x1x128xf32> to vector<1x128xf32>
    %87 = arith.mulf %66, %86 : vector<1x128xf32>
    %88 = arith.addf %60, %87 : vector<1x128xf32>
    %c3_52 = arith.constant 3 : index
    %c0_53 = arith.constant 0 : index
    %c0_54 = arith.constant 0 : index
    %89 = vector.load %arg1[%c3_52, %c0_53, %c0_54] : memref<8x1x128xf32, #tpu.memory_space<vmem>>, vector<1x1x128xf32>
    %90 = vector.shape_cast %89 : vector<1x1x128xf32> to vector<1x128xf32>
    %cst_55 = arith.constant 1.000000e+00 : f32
    %91 = vector.broadcast %cst_55 : f32 to vector<1x128xf32>
    %92 = arith.subf %91, %90 : vector<1x128xf32>
    %93 = arith.mulf %65, %92 : vector<1x128xf32>
    %94 = arith.mulf %90, %65 : vector<1x128xf32>
    %c3_56 = arith.constant 3 : index
    %c0_57 = arith.constant 0 : index
    %c0_58 = arith.constant 0 : index
    %95 = vector.load %arg4[%c3_56, %c0_57, %c0_58] : memref<16x1x128xf32, #tpu.memory_space<vmem>>, vector<1x1x128xf32>
    %96 = vector.shape_cast %95 : vector<1x1x128xf32> to vector<1x128xf32>
    %97 = vector.shape_cast %94 : vector<1x128xf32> to vector<1x1x128xf32>
    tpu.vector_store %arg4[%c3_56, %c0_57, %c0_58], %97 {strides = array<i32>} : memref<16x1x128xf32, #tpu.memory_space<vmem>>, vector<1x1x128xf32>,
    %cst_59 = arith.constant 1.000000e+00 : f32
    %98 = vector.broadcast %cst_59 : f32 to vector<1x128xf32>
    %99 = arith.subf %98, %90 : vector<1x128xf32>
    %100 = arith.mulf %72, %99 : vector<1x128xf32>
    %c12 = arith.constant 12 : index
    %c0_60 = arith.constant 0 : index
    %c0_61 = arith.constant 0 : index
    %101 = vector.load %arg2[%c12, %c0_60, %c0_61] : memref<32x1x128xf32, #tpu.memory_space<vmem>>, vector<1x1x128xf32>
    %102 = vector.shape_cast %101 : vector<1x1x128xf32> to vector<1x128xf32>
    %103 = arith.mulf %94, %102 : vector<1x128xf32>
    %104 = arith.addf %76, %103 : vector<1x128xf32>
    %c13 = arith.constant 13 : index
    %c0_62 = arith.constant 0 : index
    %c0_63 = arith.constant 0 : index
    %105 = vector.load %arg2[%c13, %c0_62, %c0_63] : memref<32x1x128xf32, #tpu.memory_space<vmem>>, vector<1x1x128xf32>
    %106 = vector.shape_cast %105 : vector<1x1x128xf32> to vector<1x128xf32>
    %107 = arith.mulf %94, %106 : vector<1x128xf32>
    %108 = arith.addf %80, %107 : vector<1x128xf32>
    %c14 = arith.constant 14 : index
    %c0_64 = arith.constant 0 : index
    %c0_65 = arith.constant 0 : index
    %109 = vector.load %arg2[%c14, %c0_64, %c0_65] : memref<32x1x128xf32, #tpu.memory_space<vmem>>, vector<1x1x128xf32>
    %110 = vector.shape_cast %109 : vector<1x1x128xf32> to vector<1x128xf32>
    %111 = arith.mulf %94, %110 : vector<1x128xf32>
    %112 = arith.addf %84, %111 : vector<1x128xf32>
    %c15 = arith.constant 15 : index
    %c0_66 = arith.constant 0 : index
    %c0_67 = arith.constant 0 : index
    %113 = vector.load %arg2[%c15, %c0_66, %c0_67] : memref<32x1x128xf32, #tpu.memory_space<vmem>>, vector<1x1x128xf32>
    %114 = vector.shape_cast %113 : vector<1x1x128xf32> to vector<1x128xf32>
    %115 = arith.mulf %94, %114 : vector<1x128xf32>
    %116 = arith.addf %88, %115 : vector<1x128xf32>
    %c4_68 = arith.constant 4 : index
    %c0_69 = arith.constant 0 : index
    %c0_70 = arith.constant 0 : index
    %117 = vector.load %arg1[%c4_68, %c0_69, %c0_70] : memref<8x1x128xf32, #tpu.memory_space<vmem>>, vector<1x1x128xf32>
    %118 = vector.shape_cast %117 : vector<1x1x128xf32> to vector<1x128xf32>
    %cst_71 = arith.constant 1.000000e+00 : f32
    %119 = vector.broadcast %cst_71 : f32 to vector<1x128xf32>
    %120 = arith.subf %119, %118 : vector<1x128xf32>
    %121 = arith.mulf %93, %120 : vector<1x128xf32>
    %122 = arith.mulf %118, %93 : vector<1x128xf32>
    %c4_72 = arith.constant 4 : index
    %c0_73 = arith.constant 0 : index
    %c0_74 = arith.constant 0 : index
    %123 = vector.load %arg4[%c4_72, %c0_73, %c0_74] : memref<16x1x128xf32, #tpu.memory_space<vmem>>, vector<1x1x128xf32>
    %124 = vector.shape_cast %123 : vector<1x1x128xf32> to vector<1x128xf32>
    %125 = vector.shape_cast %122 : vector<1x128xf32> to vector<1x1x128xf32>
    tpu.vector_store %arg4[%c4_72, %c0_73, %c0_74], %125 {strides = array<i32>} : memref<16x1x128xf32, #tpu.memory_space<vmem>>, vector<1x1x128xf32>,
    %cst_75 = arith.constant 1.000000e+00 : f32
    %126 = vector.broadcast %cst_75 : f32 to vector<1x128xf32>
    %127 = arith.subf %126, %118 : vector<1x128xf32>
    %128 = arith.mulf %100, %127 : vector<1x128xf32>
    %c16 = arith.constant 16 : index
    %c0_76 = arith.constant 0 : index
    %c0_77 = arith.constant 0 : index
    %129 = vector.load %arg2[%c16, %c0_76, %c0_77] : memref<32x1x128xf32, #tpu.memory_space<vmem>>, vector<1x1x128xf32>
    %130 = vector.shape_cast %129 : vector<1x1x128xf32> to vector<1x128xf32>
    %131 = arith.mulf %122, %130 : vector<1x128xf32>
    %132 = arith.addf %104, %131 : vector<1x128xf32>
    %c17 = arith.constant 17 : index
    %c0_78 = arith.constant 0 : index
    %c0_79 = arith.constant 0 : index
    %133 = vector.load %arg2[%c17, %c0_78, %c0_79] : memref<32x1x128xf32, #tpu.memory_space<vmem>>, vector<1x1x128xf32>
    %134 = vector.shape_cast %133 : vector<1x1x128xf32> to vector<1x128xf32>
    %135 = arith.mulf %122, %134 : vector<1x128xf32>
    %136 = arith.addf %108, %135 : vector<1x128xf32>
    %c18 = arith.constant 18 : index
    %c0_80 = arith.constant 0 : index
    %c0_81 = arith.constant 0 : index
    %137 = vector.load %arg2[%c18, %c0_80, %c0_81] : memref<32x1x128xf32, #tpu.memory_space<vmem>>, vector<1x1x128xf32>
    %138 = vector.shape_cast %137 : vector<1x1x128xf32> to vector<1x128xf32>
    %139 = arith.mulf %122, %138 : vector<1x128xf32>
    %140 = arith.addf %112, %139 : vector<1x128xf32>
    %c19 = arith.constant 19 : index
    %c0_82 = arith.constant 0 : index
    %c0_83 = arith.constant 0 : index
    %141 = vector.load %arg2[%c19, %c0_82, %c0_83] : memref<32x1x128xf32, #tpu.memory_space<vmem>>, vector<1x1x128xf32>
    %142 = vector.shape_cast %141 : vector<1x1x128xf32> to vector<1x128xf32>
    %143 = arith.mulf %122, %142 : vector<1x128xf32>
    %144 = arith.addf %116, %143 : vector<1x128xf32>
    %c5_84 = arith.constant 5 : index
    %c0_85 = arith.constant 0 : index
    %c0_86 = arith.constant 0 : index
    %145 = vector.load %arg1[%c5_84, %c0_85, %c0_86] : memref<8x1x128xf32, #tpu.memory_space<vmem>>, vector<1x1x128xf32>
    %146 = vector.shape_cast %145 : vector<1x1x128xf32> to vector<1x128xf32>
    %cst_87 = arith.constant 1.000000e+00 : f32
    %147 = vector.broadcast %cst_87 : f32 to vector<1x128xf32>
    %148 = arith.subf %147, %146 : vector<1x128xf32>
    %149 = arith.mulf %121, %148 : vector<1x128xf32>
    %150 = arith.mulf %146, %121 : vector<1x128xf32>
    %c5_88 = arith.constant 5 : index
    %c0_89 = arith.constant 0 : index
    %c0_90 = arith.constant 0 : index
    %151 = vector.load %arg4[%c5_88, %c0_89, %c0_90] : memref<16x1x128xf32, #tpu.memory_space<vmem>>, vector<1x1x128xf32>
    %152 = vector.shape_cast %151 : vector<1x1x128xf32> to vector<1x128xf32>
    %153 = vector.shape_cast %150 : vector<1x128xf32> to vector<1x1x128xf32>
    tpu.vector_store %arg4[%c5_88, %c0_89, %c0_90], %153 {strides = array<i32>} : memref<16x1x128xf32, #tpu.memory_space<vmem>>, vector<1x1x128xf32>,
    %cst_91 = arith.constant 1.000000e+00 : f32
    %154 = vector.broadcast %cst_91 : f32 to vector<1x128xf32>
    %155 = arith.subf %154, %146 : vector<1x128xf32>
    %156 = arith.mulf %128, %155 : vector<1x128xf32>
    %c20 = arith.constant 20 : index
    %c0_92 = arith.constant 0 : index
    %c0_93 = arith.constant 0 : index
    %157 = vector.load %arg2[%c20, %c0_92, %c0_93] : memref<32x1x128xf32, #tpu.memory_space<vmem>>, vector<1x1x128xf32>
    %158 = vector.shape_cast %157 : vector<1x1x128xf32> to vector<1x128xf32>
    %159 = arith.mulf %150, %158 : vector<1x128xf32>
    %160 = arith.addf %132, %159 : vector<1x128xf32>
    %c21 = arith.constant 21 : index
    %c0_94 = arith.constant 0 : index
    %c0_95 = arith.constant 0 : index
    %161 = vector.load %arg2[%c21, %c0_94, %c0_95] : memref<32x1x128xf32, #tpu.memory_space<vmem>>, vector<1x1x128xf32>
    %162 = vector.shape_cast %161 : vector<1x1x128xf32> to vector<1x128xf32>
    %163 = arith.mulf %150, %162 : vector<1x128xf32>
    %164 = arith.addf %136, %163 : vector<1x128xf32>
    %c22 = arith.constant 22 : index
    %c0_96 = arith.constant 0 : index
    %c0_97 = arith.constant 0 : index
    %165 = vector.load %arg2[%c22, %c0_96, %c0_97] : memref<32x1x128xf32, #tpu.memory_space<vmem>>, vector<1x1x128xf32>
    %166 = vector.shape_cast %165 : vector<1x1x128xf32> to vector<1x128xf32>
    %167 = arith.mulf %150, %166 : vector<1x128xf32>
    %168 = arith.addf %140, %167 : vector<1x128xf32>
    %c23 = arith.constant 23 : index
    %c0_98 = arith.constant 0 : index
    %c0_99 = arith.constant 0 : index
    %169 = vector.load %arg2[%c23, %c0_98, %c0_99] : memref<32x1x128xf32, #tpu.memory_space<vmem>>, vector<1x1x128xf32>
    %170 = vector.shape_cast %169 : vector<1x1x128xf32> to vector<1x128xf32>
    %171 = arith.mulf %150, %170 : vector<1x128xf32>
    %172 = arith.addf %144, %171 : vector<1x128xf32>
    %c6_100 = arith.constant 6 : index
    %c0_101 = arith.constant 0 : index
    %c0_102 = arith.constant 0 : index
    %173 = vector.load %arg1[%c6_100, %c0_101, %c0_102] : memref<8x1x128xf32, #tpu.memory_space<vmem>>, vector<1x1x128xf32>
    %174 = vector.shape_cast %173 : vector<1x1x128xf32> to vector<1x128xf32>
    %cst_103 = arith.constant 1.000000e+00 : f32
    %175 = vector.broadcast %cst_103 : f32 to vector<1x128xf32>
    %176 = arith.subf %175, %174 : vector<1x128xf32>
    %177 = arith.mulf %149, %176 : vector<1x128xf32>
    %178 = arith.mulf %174, %149 : vector<1x128xf32>
    %c6_104 = arith.constant 6 : index
    %c0_105 = arith.constant 0 : index
    %c0_106 = arith.constant 0 : index
    %179 = vector.load %arg4[%c6_104, %c0_105, %c0_106] : memref<16x1x128xf32, #tpu.memory_space<vmem>>, vector<1x1x128xf32>
    %180 = vector.shape_cast %179 : vector<1x1x128xf32> to vector<1x128xf32>
    %181 = vector.shape_cast %178 : vector<1x128xf32> to vector<1x1x128xf32>
    tpu.vector_store %arg4[%c6_104, %c0_105, %c0_106], %181 {strides = array<i32>} : memref<16x1x128xf32, #tpu.memory_space<vmem>>, vector<1x1x128xf32>,
    %cst_107 = arith.constant 1.000000e+00 : f32
    %182 = vector.broadcast %cst_107 : f32 to vector<1x128xf32>
    %183 = arith.subf %182, %174 : vector<1x128xf32>
    %184 = arith.mulf %156, %183 : vector<1x128xf32>
    %c24 = arith.constant 24 : index
    %c0_108 = arith.constant 0 : index
    %c0_109 = arith.constant 0 : index
    %185 = vector.load %arg2[%c24, %c0_108, %c0_109] : memref<32x1x128xf32, #tpu.memory_space<vmem>>, vector<1x1x128xf32>
    %186 = vector.shape_cast %185 : vector<1x1x128xf32> to vector<1x128xf32>
    %187 = arith.mulf %178, %186 : vector<1x128xf32>
    %188 = arith.addf %160, %187 : vector<1x128xf32>
    %c25 = arith.constant 25 : index
    %c0_110 = arith.constant 0 : index
    %c0_111 = arith.constant 0 : index
    %189 = vector.load %arg2[%c25, %c0_110, %c0_111] : memref<32x1x128xf32, #tpu.memory_space<vmem>>, vector<1x1x128xf32>
    %190 = vector.shape_cast %189 : vector<1x1x128xf32> to vector<1x128xf32>
    %191 = arith.mulf %178, %190 : vector<1x128xf32>
    %192 = arith.addf %164, %191 : vector<1x128xf32>
    %c26 = arith.constant 26 : index
    %c0_112 = arith.constant 0 : index
    %c0_113 = arith.constant 0 : index
    %193 = vector.load %arg2[%c26, %c0_112, %c0_113] : memref<32x1x128xf32, #tpu.memory_space<vmem>>, vector<1x1x128xf32>
    %194 = vector.shape_cast %193 : vector<1x1x128xf32> to vector<1x128xf32>
    %195 = arith.mulf %178, %194 : vector<1x128xf32>
    %196 = arith.addf %168, %195 : vector<1x128xf32>
    %c27 = arith.constant 27 : index
    %c0_114 = arith.constant 0 : index
    %c0_115 = arith.constant 0 : index
    %197 = vector.load %arg2[%c27, %c0_114, %c0_115] : memref<32x1x128xf32, #tpu.memory_space<vmem>>, vector<1x1x128xf32>
    %198 = vector.shape_cast %197 : vector<1x1x128xf32> to vector<1x128xf32>
    %199 = arith.mulf %178, %198 : vector<1x128xf32>
    %200 = arith.addf %172, %199 : vector<1x128xf32>
    %c7_116 = arith.constant 7 : index
    %c0_117 = arith.constant 0 : index
    %c0_118 = arith.constant 0 : index
    %201 = vector.load %arg1[%c7_116, %c0_117, %c0_118] : memref<8x1x128xf32, #tpu.memory_space<vmem>>, vector<1x1x128xf32>
    %202 = vector.shape_cast %201 : vector<1x1x128xf32> to vector<1x128xf32>
    %203 = arith.mulf %202, %177 : vector<1x128xf32>
    %c7_119 = arith.constant 7 : index
    %c0_120 = arith.constant 0 : index
    %c0_121 = arith.constant 0 : index
    %204 = vector.load %arg4[%c7_119, %c0_120, %c0_121] : memref<16x1x128xf32, #tpu.memory_space<vmem>>, vector<1x1x128xf32>
    %205 = vector.shape_cast %204 : vector<1x1x128xf32> to vector<1x128xf32>
    %206 = vector.shape_cast %203 : vector<1x128xf32> to vector<1x1x128xf32>
    tpu.vector_store %arg4[%c7_119, %c0_120, %c0_121], %206 {strides = array<i32>} : memref<16x1x128xf32, #tpu.memory_space<vmem>>, vector<1x1x128xf32>,
    %cst_122 = arith.constant 1.000000e+00 : f32
    %207 = vector.broadcast %cst_122 : f32 to vector<1x128xf32>
    %208 = arith.subf %207, %202 : vector<1x128xf32>
    %209 = arith.mulf %184, %208 : vector<1x128xf32>
    %c28 = arith.constant 28 : index
    %c0_123 = arith.constant 0 : index
    %c0_124 = arith.constant 0 : index
    %210 = vector.load %arg2[%c28, %c0_123, %c0_124] : memref<32x1x128xf32, #tpu.memory_space<vmem>>, vector<1x1x128xf32>
    %211 = vector.shape_cast %210 : vector<1x1x128xf32> to vector<1x128xf32>
    %212 = arith.mulf %203, %211 : vector<1x128xf32>
    %213 = arith.addf %188, %212 : vector<1x128xf32>
    %c29 = arith.constant 29 : index
    %c0_125 = arith.constant 0 : index
    %c0_126 = arith.constant 0 : index
    %214 = vector.load %arg2[%c29, %c0_125, %c0_126] : memref<32x1x128xf32, #tpu.memory_space<vmem>>, vector<1x1x128xf32>
    %215 = vector.shape_cast %214 : vector<1x1x128xf32> to vector<1x128xf32>
    %216 = arith.mulf %203, %215 : vector<1x128xf32>
    %217 = arith.addf %192, %216 : vector<1x128xf32>
    %c30 = arith.constant 30 : index
    %c0_127 = arith.constant 0 : index
    %c0_128 = arith.constant 0 : index
    %218 = vector.load %arg2[%c30, %c0_127, %c0_128] : memref<32x1x128xf32, #tpu.memory_space<vmem>>, vector<1x1x128xf32>
    %219 = vector.shape_cast %218 : vector<1x1x128xf32> to vector<1x128xf32>
    %220 = arith.mulf %203, %219 : vector<1x128xf32>
    %221 = arith.addf %196, %220 : vector<1x128xf32>
    %c31 = arith.constant 31 : index
    %c0_129 = arith.constant 0 : index
    %c0_130 = arith.constant 0 : index
    %222 = vector.load %arg2[%c31, %c0_129, %c0_130] : memref<32x1x128xf32, #tpu.memory_space<vmem>>, vector<1x1x128xf32>
    %223 = vector.shape_cast %222 : vector<1x1x128xf32> to vector<1x128xf32>
    %224 = arith.mulf %203, %223 : vector<1x128xf32>
    %225 = arith.addf %200, %224 : vector<1x128xf32>
    %c0_131 = arith.constant 0 : index
    %c0_132 = arith.constant 0 : index
    %c0_133 = arith.constant 0 : index
    %226 = vector.load %arg3[%c0_131, %c0_132, %c0_133] : memref<5x1x128xf32, #tpu.memory_space<vmem>>, vector<1x1x128xf32>
    %227 = vector.shape_cast %226 : vector<1x1x128xf32> to vector<1x128xf32>
    %228 = vector.shape_cast %213 : vector<1x128xf32> to vector<1x1x128xf32>
    tpu.vector_store %arg3[%c0_131, %c0_132, %c0_133], %228 {strides = array<i32>} : memref<5x1x128xf32, #tpu.memory_space<vmem>>, vector<1x1x128xf32>,
    %c1_134 = arith.constant 1 : index
    %c0_135 = arith.constant 0 : index
    %c0_136 = arith.constant 0 : index
    %229 = vector.load %arg3[%c1_134, %c0_135, %c0_136] : memref<5x1x128xf32, #tpu.memory_space<vmem>>, vector<1x1x128xf32>
    %230 = vector.shape_cast %229 : vector<1x1x128xf32> to vector<1x128xf32>
    %231 = vector.shape_cast %217 : vector<1x128xf32> to vector<1x1x128xf32>
    tpu.vector_store %arg3[%c1_134, %c0_135, %c0_136], %231 {strides = array<i32>} : memref<5x1x128xf32, #tpu.memory_space<vmem>>, vector<1x1x128xf32>,
    %c2_137 = arith.constant 2 : index
    %c0_138 = arith.constant 0 : index
    %c0_139 = arith.constant 0 : index
    %232 = vector.load %arg3[%c2_137, %c0_138, %c0_139] : memref<5x1x128xf32, #tpu.memory_space<vmem>>, vector<1x1x128xf32>
    %233 = vector.shape_cast %232 : vector<1x1x128xf32> to vector<1x128xf32>
    %234 = vector.shape_cast %221 : vector<1x128xf32> to vector<1x1x128xf32>
    tpu.vector_store %arg3[%c2_137, %c0_138, %c0_139], %234 {strides = array<i32>} : memref<5x1x128xf32, #tpu.memory_space<vmem>>, vector<1x1x128xf32>,
    %c3_140 = arith.constant 3 : index
    %c0_141 = arith.constant 0 : index
    %c0_142 = arith.constant 0 : index
    %235 = vector.load %arg3[%c3_140, %c0_141, %c0_142] : memref<5x1x128xf32, #tpu.memory_space<vmem>>, vector<1x1x128xf32>
    %236 = vector.shape_cast %235 : vector<1x1x128xf32> to vector<1x128xf32>
    %237 = vector.shape_cast %225 : vector<1x128xf32> to vector<1x1x128xf32>
    tpu.vector_store %arg3[%c3_140, %c0_141, %c0_142], %237 {strides = array<i32>} : memref<5x1x128xf32, #tpu.memory_space<vmem>>, vector<1x1x128xf32>,
    %cst_143 = arith.constant 1.000000e+00 : f32
    %238 = vector.broadcast %cst_143 : f32 to vector<1x128xf32>
    %239 = arith.subf %238, %209 : vector<1x128xf32>
    %c4_144 = arith.constant 4 : index
    %c0_145 = arith.constant 0 : index
    %c0_146 = arith.constant 0 : index
    %240 = vector.load %arg3[%c4_144, %c0_145, %c0_146] : memref<5x1x128xf32, #tpu.memory_space<vmem>>, vector<1x1x128xf32>
    %241 = vector.shape_cast %240 : vector<1x1x128xf32> to vector<1x128xf32>
    %242 = vector.shape_cast %239 : vector<1x128xf32> to vector<1x1x128xf32>
    tpu.vector_store %arg3[%c4_144, %c0_145, %c0_146], %242 {strides = array<i32>} : memref<5x1x128xf32, #tpu.memory_space<vmem>>, vector<1x1x128xf32>,
    %c7_147 = arith.constant 7 : index
    %c0_148 = arith.constant 0 : index
    %c0_149 = arith.constant 0 : index
    %243 = vector.load %arg1[%c7_147, %c0_148, %c0_149] : memref<8x1x128xf32, #tpu.memory_space<vmem>>, vector<1x1x128xf32>
    %244 = vector.shape_cast %243 : vector<1x1x128xf32> to vector<1x128xf32>
    %cst_150 = arith.constant 1.000000e+00 : f32
    %245 = vector.broadcast %cst_150 : f32 to vector<1x128xf32>
    %246 = arith.subf %245, %244 : vector<1x128xf32>
    %247 = arith.mulf %0, %246 : vector<1x128xf32>
    %248 = arith.mulf %244, %0 : vector<1x128xf32>
    %c15_151 = arith.constant 15 : index
    %c0_152 = arith.constant 0 : index
    %c0_153 = arith.constant 0 : index
    %249 = vector.load %arg4[%c15_151, %c0_152, %c0_153] : memref<16x1x128xf32, #tpu.memory_space<vmem>>, vector<1x1x128xf32>
    %250 = vector.shape_cast %249 : vector<1x1x128xf32> to vector<1x128xf32>
    %251 = vector.shape_cast %248 : vector<1x128xf32> to vector<1x1x128xf32>
    tpu.vector_store %arg4[%c15_151, %c0_152, %c0_153], %251 {strides = array<i32>} : memref<16x1x128xf32, #tpu.memory_space<vmem>>, vector<1x1x128xf32>,
    %c6_154 = arith.constant 6 : index
    %c0_155 = arith.constant 0 : index
    %c0_156 = arith.constant 0 : index
    %252 = vector.load %arg1[%c6_154, %c0_155, %c0_156] : memref<8x1x128xf32, #tpu.memory_space<vmem>>, vector<1x1x128xf32>
    %253 = vector.shape_cast %252 : vector<1x1x128xf32> to vector<1x128xf32>
    %cst_157 = arith.constant 1.000000e+00 : f32
    %254 = vector.broadcast %cst_157 : f32 to vector<1x128xf32>
    %255 = arith.subf %254, %253 : vector<1x128xf32>
    %256 = arith.mulf %247, %255 : vector<1x128xf32>
    %257 = arith.mulf %253, %247 : vector<1x128xf32>
    %c14_158 = arith.constant 14 : index
    %c0_159 = arith.constant 0 : index
    %c0_160 = arith.constant 0 : index
    %258 = vector.load %arg4[%c14_158, %c0_159, %c0_160] : memref<16x1x128xf32, #tpu.memory_space<vmem>>, vector<1x1x128xf32>
    %259 = vector.shape_cast %258 : vector<1x1x128xf32> to vector<1x128xf32>
    %260 = vector.shape_cast %257 : vector<1x128xf32> to vector<1x1x128xf32>
    tpu.vector_store %arg4[%c14_158, %c0_159, %c0_160], %260 {strides = array<i32>} : memref<16x1x128xf32, #tpu.memory_space<vmem>>, vector<1x1x128xf32>,
    %c5_161 = arith.constant 5 : index
    %c0_162 = arith.constant 0 : index
    %c0_163 = arith.constant 0 : index
    %261 = vector.load %arg1[%c5_161, %c0_162, %c0_163] : memref<8x1x128xf32, #tpu.memory_space<vmem>>, vector<1x1x128xf32>
    %262 = vector.shape_cast %261 : vector<1x1x128xf32> to vector<1x128xf32>
    %cst_164 = arith.constant 1.000000e+00 : f32
    %263 = vector.broadcast %cst_164 : f32 to vector<1x128xf32>
    %264 = arith.subf %263, %262 : vector<1x128xf32>
    %265 = arith.mulf %256, %264 : vector<1x128xf32>
    %266 = arith.mulf %262, %256 : vector<1x128xf32>
    %c13_165 = arith.constant 13 : index
    %c0_166 = arith.constant 0 : index
    %c0_167 = arith.constant 0 : index
    %267 = vector.load %arg4[%c13_165, %c0_166, %c0_167] : memref<16x1x128xf32, #tpu.memory_space<vmem>>, vector<1x1x128xf32>
    %268 = vector.shape_cast %267 : vector<1x1x128xf32> to vector<1x128xf32>
    %269 = vector.shape_cast %266 : vector<1x128xf32> to vector<1x1x128xf32>
    tpu.vector_store %arg4[%c13_165, %c0_166, %c0_167], %269 {strides = array<i32>} : memref<16x1x128xf32, #tpu.memory_space<vmem>>, vector<1x1x128xf32>,
    %c4_168 = arith.constant 4 : index
    %c0_169 = arith.constant 0 : index
    %c0_170 = arith.constant 0 : index
    %270 = vector.load %arg1[%c4_168, %c0_169, %c0_170] : memref<8x1x128xf32, #tpu.memory_space<vmem>>, vector<1x1x128xf32>
    %271 = vector.shape_cast %270 : vector<1x1x128xf32> to vector<1x128xf32>
    %cst_171 = arith.constant 1.000000e+00 : f32
    %272 = vector.broadcast %cst_171 : f32 to vector<1x128xf32>
    %273 = arith.subf %272, %271 : vector<1x128xf32>
    %274 = arith.mulf %265, %273 : vector<1x128xf32>
    %275 = arith.mulf %271, %265 : vector<1x128xf32>
    %c12_172 = arith.constant 12 : index
    %c0_173 = arith.constant 0 : index
    %c0_174 = arith.constant 0 : index
    %276 = vector.load %arg4[%c12_172, %c0_173, %c0_174] : memref<16x1x128xf32, #tpu.memory_space<vmem>>, vector<1x1x128xf32>
    %277 = vector.shape_cast %276 : vector<1x1x128xf32> to vector<1x128xf32>
    %278 = vector.shape_cast %275 : vector<1x128xf32> to vector<1x1x128xf32>
    tpu.vector_store %arg4[%c12_172, %c0_173, %c0_174], %278 {strides = array<i32>} : memref<16x1x128xf32, #tpu.memory_space<vmem>>, vector<1x1x128xf32>,
    %c3_175 = arith.constant 3 : index
    %c0_176 = arith.constant 0 : index
    %c0_177 = arith.constant 0 : index
    %279 = vector.load %arg1[%c3_175, %c0_176, %c0_177] : memref<8x1x128xf32, #tpu.memory_space<vmem>>, vector<1x1x128xf32>
    %280 = vector.shape_cast %279 : vector<1x1x128xf32> to vector<1x128xf32>
    %cst_178 = arith.constant 1.000000e+00 : f32
    %281 = vector.broadcast %cst_178 : f32 to vector<1x128xf32>
    %282 = arith.subf %281, %280 : vector<1x128xf32>
    %283 = arith.mulf %274, %282 : vector<1x128xf32>
    %284 = arith.mulf %280, %274 : vector<1x128xf32>
    %c11_179 = arith.constant 11 : index
    %c0_180 = arith.constant 0 : index
    %c0_181 = arith.constant 0 : index
    %285 = vector.load %arg4[%c11_179, %c0_180, %c0_181] : memref<16x1x128xf32, #tpu.memory_space<vmem>>, vector<1x1x128xf32>
    %286 = vector.shape_cast %285 : vector<1x1x128xf32> to vector<1x128xf32>
    %287 = vector.shape_cast %284 : vector<1x128xf32> to vector<1x1x128xf32>
    tpu.vector_store %arg4[%c11_179, %c0_180, %c0_181], %287 {strides = array<i32>} : memref<16x1x128xf32, #tpu.memory_space<vmem>>, vector<1x1x128xf32>,
    %c2_182 = arith.constant 2 : index
    %c0_183 = arith.constant 0 : index
    %c0_184 = arith.constant 0 : index
    %288 = vector.load %arg1[%c2_182, %c0_183, %c0_184] : memref<8x1x128xf32, #tpu.memory_space<vmem>>, vector<1x1x128xf32>
    %289 = vector.shape_cast %288 : vector<1x1x128xf32> to vector<1x128xf32>
    %cst_185 = arith.constant 1.000000e+00 : f32
    %290 = vector.broadcast %cst_185 : f32 to vector<1x128xf32>
    %291 = arith.subf %290, %289 : vector<1x128xf32>
    %292 = arith.mulf %283, %291 : vector<1x128xf32>
    %293 = arith.mulf %289, %283 : vector<1x128xf32>
    %c10_186 = arith.constant 10 : index
    %c0_187 = arith.constant 0 : index
    %c0_188 = arith.constant 0 : index
    %294 = vector.load %arg4[%c10_186, %c0_187, %c0_188] : memref<16x1x128xf32, #tpu.memory_space<vmem>>, vector<1x1x128xf32>
    %295 = vector.shape_cast %294 : vector<1x1x128xf32> to vector<1x128xf32>
    %296 = vector.shape_cast %293 : vector<1x128xf32> to vector<1x1x128xf32>
    tpu.vector_store %arg4[%c10_186, %c0_187, %c0_188], %296 {strides = array<i32>} : memref<16x1x128xf32, #tpu.memory_space<vmem>>, vector<1x1x128xf32>,
    %c1_189 = arith.constant 1 : index
    %c0_190 = arith.constant 0 : index
    %c0_191 = arith.constant 0 : index
    %297 = vector.load %arg1[%c1_189, %c0_190, %c0_191] : memref<8x1x128xf32, #tpu.memory_space<vmem>>, vector<1x1x128xf32>
    %298 = vector.shape_cast %297 : vector<1x1x128xf32> to vector<1x128xf32>
    %cst_192 = arith.constant 1.000000e+00 : f32
    %299 = vector.broadcast %cst_192 : f32 to vector<1x128xf32>
    %300 = arith.subf %299, %298 : vector<1x128xf32>
    %301 = arith.mulf %292, %300 : vector<1x128xf32>
    %302 = arith.mulf %298, %292 : vector<1x128xf32>
    %c9_193 = arith.constant 9 : index
    %c0_194 = arith.constant 0 : index
    %c0_195 = arith.constant 0 : index
    %303 = vector.load %arg4[%c9_193, %c0_194, %c0_195] : memref<16x1x128xf32, #tpu.memory_space<vmem>>, vector<1x1x128xf32>
    %304 = vector.shape_cast %303 : vector<1x1x128xf32> to vector<1x128xf32>
    %305 = vector.shape_cast %302 : vector<1x128xf32> to vector<1x1x128xf32>
    tpu.vector_store %arg4[%c9_193, %c0_194, %c0_195], %305 {strides = array<i32>} : memref<16x1x128xf32, #tpu.memory_space<vmem>>, vector<1x1x128xf32>,
    %c0_196 = arith.constant 0 : index
    %c0_197 = arith.constant 0 : index
    %c0_198 = arith.constant 0 : index
    %306 = vector.load %arg1[%c0_196, %c0_197, %c0_198] : memref<8x1x128xf32, #tpu.memory_space<vmem>>, vector<1x1x128xf32>
    %307 = vector.shape_cast %306 : vector<1x1x128xf32> to vector<1x128xf32>
    %308 = arith.mulf %307, %301 : vector<1x128xf32>
    %c8_199 = arith.constant 8 : index
    %c0_200 = arith.constant 0 : index
    %c0_201 = arith.constant 0 : index
    %309 = vector.load %arg4[%c8_199, %c0_200, %c0_201] : memref<16x1x128xf32, #tpu.memory_space<vmem>>, vector<1x1x128xf32>
    %310 = vector.shape_cast %309 : vector<1x1x128xf32> to vector<1x128xf32>
    %311 = vector.shape_cast %308 : vector<1x128xf32> to vector<1x1x128xf32>
    tpu.vector_store %arg4[%c8_199, %c0_200, %c0_201], %311 {strides = array<i32>} : memref<16x1x128xf32, #tpu.memory_space<vmem>>, vector<1x1x128xf32>,
    return
  }
  func.func @transform_0(%arg0: i32) -> (i32, i32, i32) {
    %c0_i32 = arith.constant 0 : i32
    %c0_i32_0 = arith.constant 0 : i32
    %c0_i32_1 = arith.constant 0 : i32
    return %c0_i32, %arg0, %c0_i32_0 : i32, i32, i32
  }
  func.func @transform_1(%arg0: i32) -> (i32, i32, i32) {
    %c0_i32 = arith.constant 0 : i32
    %c0_i32_0 = arith.constant 0 : i32
    %c0_i32_1 = arith.constant 0 : i32
    return %c0_i32, %arg0, %c0_i32_0 : i32, i32, i32
  }
  func.func @transform_2(%arg0: i32) -> (i32, i32, i32) {
    %c0_i32 = arith.constant 0 : i32
    %c0_i32_0 = arith.constant 0 : i32
    %c0_i32_1 = arith.constant 0 : i32
    return %c0_i32, %arg0, %c0_i32_0 : i32, i32, i32
  }
  func.func @transform_3(%arg0: i32) -> (i32, i32, i32) {
    %c0_i32 = arith.constant 0 : i32
    %c0_i32_0 = arith.constant 0 : i32
    %c0_i32_1 = arith.constant 0 : i32
    return %c0_i32, %arg0, %c0_i32_0 : i32, i32, i32
  }
}

</mosaic_0001>

<bundles_post_ra>
// kernel: tpu_custom_call.1
= control target key start
LH: loop header
LB: loop body
LE: loop exit
PB: predicated region body
PF: predicated region fallthrough
CT: control target
= control target key end

     0   :  { %9 = vsyncpa [#allocation3], 0  ;;  %s511_s0 = inlined_call_operand.hbm [shape: f32[8,1,128], index: 0, kind: input, shape index: {}]   ;;  %s512_s1 = inlined_call_operand.hbm [shape: f32[32,1,128], index: 1, kind: input, shape index: {}]   ;;  %s513_s2 = inlined_call_operand.hbm [shape: f32[5,1,128], index: 2, kind: output, shape index: {0}]   ;;  %s514_s3 = inlined_call_operand.hbm [shape: f32[16,1,128], index: 3, kind: output, shape index: {1}]  }
   0x1   :  { %10 = vsyncpa [#allocation6], 0 }
   0x2   :  { %11 = vsyncpa [#allocation4], 0 }
   0x3   :  { %12 = vsyncpa [#allocation9], 0  ;;  %s404_s12 = smov [#allocation2]  }
   0x4   :  { %s18_s13 = sshll.u32 %s404_s12, 4  ;;  %s19_s13 = int_to_ptr.vmem [resolvable:$true] %s18_s13 }
   0x5   :  { %s324_s14 = scalar_lea.vmem %s19_s13, 128  ;;  %p329_p1 = scmp.lt.s32.totalorder %s19_s13, %s19_s13 }
   0x6   :  { %p325_p0 = scmp.ne.s32.totalorder %s19_s13, %s324_s14  ;;  %p330_p2 = scmp.lt.s32.totalorder %s324_s14, %s324_s14 }
   0x8   :  { %p331_p3 = por %p330_p2, %p329_p1 }
   0xa   :  { %p332_p4 = pnand %p331_p3, %p325_p0 }
   0xc   :  { %335 = shalt.err (!%p332_p4)
}
   0xd   :  { %s405_s15 = smov 16   ;;  %s406_s16 = smov 1  }
   0xe   :  { %24 = dma.hbm_to_vmem [thread:$0]  %s511_s0, 128, %s19_s13, [#allocation3], %s405_s15, %s405_s15, %s406_s16  }
   0xf   :  { %s407_s19 = smov [#allocation5]  }
  0x10   :  { %s30_s20 = sshll.u32 %s407_s19, 4  ;;  %s31_s20 = int_to_ptr.vmem [resolvable:$true] %s30_s20 }
  0x11   :  { %s344_s21 = scalar_lea.vmem %s31_s20, 512  ;;  %p349_p6 = scmp.lt.s32.totalorder %s31_s20, %s31_s20 }
  0x12   :  { %p345_p5 = scmp.ne.s32.totalorder %s31_s20, %s344_s21  ;;  %p350_p7 = scmp.lt.s32.totalorder %s344_s21, %s344_s21 }
  0x14   :  { %p351_p8 = por %p350_p7, %p349_p6 }
  0x16   :  { %p352_p9 = pnand %p351_p8, %p345_p5 }
  0x18   :  { %355 = shalt.err (!%p352_p9)
}
  0x19   :  { %36 = dma.hbm_to_vmem [thread:$0]  %s512_s1, 512, %s31_s20, [#allocation6], %s405_s15, %s405_s15, %s406_s16  }
  0x1a   :  { %396 = dma.done.wait [#allocation3], 128  }
  0x1b   :  { %397 = vsyncadd [#allocation3], 4294967168 }
  0x1c   :  { %398 = dma.done.wait [#allocation6], 512  }
  0x1d   :  { %399 = vsyncadd [#allocation6], 4294966784  ;;  %v442_v0 = vld [vmem:[#allocation2] sm:$0x1]  ;;  %v62_v1 = vld [vmem:[#allocation2 + $0x1] sm:$0x1] }
  0x1e   :  { %v85_v2 = vld [vmem:[#allocation2 + $0x2] sm:$0x1]  ;;  %45 = vst [vmem:[#allocation8] sm:$0x1] %v442_v0  ;;  %v44_v3 = vsub.f32 1.0, %v442_v0  ;;  %v63_v4 = vsub.f32 1.0, %v62_v1 }
  0x1f   :  { %v86_v5 = vsub.f32 1.0, %v85_v2  ;;  %v108_v6 = vld [vmem:[#allocation2 + $0x3] sm:$0x1]  ;;  %v131_v7 = vld [vmem:[#allocation2 + $0x4] sm:$0x1]  ;;  %s408_s0 = smov [#allocation7]  }
  0x20   :  { %v446_v8 = vmul.f32 %v62_v1, %v44_v3  ;;  %v64_v9 = vmul.f32 %v63_v4, %v44_v3  ;;  %v109_v10 = vsub.f32 1.0, %v108_v6  ;;  %v154_v11 = vld [vmem:[#allocation2 + $0x5] sm:$0x1]  ;;  %v132_v12 = vsub.f32 1.0, %v131_v7  ;;  %v46_v13 = vld [vmem:[#allocation5] sm:$0x1] }
  0x21   :  { %v69_v14 = vld [vmem:[#allocation5 + $0x4] sm:$0x1]  ;;  %v177_v17 = vld [vmem:[#allocation2 + $0x6] sm:$0x1]  ;;  %v47_v18 = vmul.f32 %v46_v13, %v442_v0  ;;  %v92_v20 = vld [vmem:[#allocation5 + $0x8] sm:$0x1] }
  0x22   :  { %67 = vst [vmem:[#allocation8 + $0x1] sm:$0x1] %v446_v8  ;;  %v449_v15 = vmul.f32 %v85_v2, %v64_v9  ;;  %v87_v16 = vmul.f32 %v86_v5, %v64_v9  ;;  %v70_v19 = vmul.f32 %v69_v14, %v446_v8  ;;  %v155_v21 = vsub.f32 1.0, %v154_v11  ;;  %v115_v22 = vld [vmem:[#allocation5 + $0xc] sm:$0x1]  ;;  %s281_s1 = sshll.u32 %s408_s0, 4  ;;  %s282_s1 = int_to_ptr.vmem [resolvable:$true] %s281_s1 }
  0x23   :  { %v50_v27 = vld [vmem:[#allocation5 + $0x1] sm:$0x1]  ;;  %v73_v28 = vld [vmem:[#allocation5 + $0x5] sm:$0x1]  ;;  %v96_v29 = vld [vmem:[#allocation5 + $0x9] sm:$0x1]  ;;  %p361_p11 = scmp.lt.s32.totalorder %s282_s1, %s282_s1 }
  0x24   :  { %90 = vst [vmem:[#allocation8 + $0x2] sm:$0x1] %v449_v15  ;;  %v454_v23 = vmul.f32 %v108_v6, %v87_v16  ;;  %v110_v24 = vmul.f32 %v109_v10, %v87_v16  ;;  %v71_v25 = vadd.f32 %v70_v19, %v47_v18  ;;  %v93_v26 = vmul.f32 %v92_v20, %v449_v15  ;;  %v138_v31 = vld [vmem:[#allocation5 + $0x10] sm:$0x1]  ;;  %v119_v35 = vld [vmem:[#allocation5 + $0xd] sm:$0x1] }
  0x25   :  { %v178_v30 = vsub.f32 1.0, %v177_v17  ;;  %v51_v32 = vmul.f32 %v50_v27, %v442_v0  ;;  %v74_v33 = vmul.f32 %v73_v28, %v446_v8  ;;  %v97_v34 = vmul.f32 %v96_v29, %v449_v15  ;;  %v142_v40 = vld [vmem:[#allocation5 + $0x11] sm:$0x1]  ;;  %v54_v41 = vld [vmem:[#allocation5 + $0x2] sm:$0x1]  ;;  %s409_s24 = smov [#allocation8]  }
  0x26   :  { %113 = vst [vmem:[#allocation8 + $0x3] sm:$0x1] %v454_v23  ;;  %v461_v36 = vmul.f32 %v131_v7, %v110_v24  ;;  %v133_v37 = vmul.f32 %v132_v12, %v110_v24  ;;  %v94_v38 = vadd.f32 %v93_v26, %v71_v25  ;;  %v116_v39 = vmul.f32 %v115_v22, %v454_v23  ;;  %v161_v42 = vld [vmem:[#allocation5 + $0x14] sm:$0x1]  ;;  %v77_v46 = vld [vmem:[#allocation5 + $0x6] sm:$0x1] }
  0x27   :  { %v75_v43 = vadd.f32 %v74_v33, %v51_v32  ;;  %v120_v44 = vmul.f32 %v119_v35, %v454_v23  ;;  %v55_v45 = vmul.f32 %v54_v41, %v442_v0  ;;  %v100_v47 = vld [vmem:[#allocation5 + $0xa] sm:$0x1]  ;;  %v165_v52 = vld [vmem:[#allocation5 + $0x15] sm:$0x1]  ;;  %v123_v53 = vld [vmem:[#allocation5 + $0xe] sm:$0x1]  ;;  %v78_v58 = vmul.f32 %v77_v46, %v446_v8 }
  0x28   :  { %136 = vst [vmem:[#allocation8 + $0x4] sm:$0x1] %v461_v36  ;;  %v467_v48 = vmul.f32 %v154_v11, %v133_v37  ;;  %v156_v49 = vmul.f32 %v155_v21, %v133_v37  ;;  %v117_v50 = vadd.f32 %v116_v39, %v94_v38  ;;  %v139_v51 = vmul.f32 %v138_v31, %v461_v36  ;;  %v200_v54 = vld [vmem:[#allocation2 + $0x7] sm:$0x1]  ;;  %v184_v55 = vld [vmem:[#allocation5 + $0x18] sm:$0x1] }
  0x29   :  { %v98_v56 = vadd.f32 %v97_v34, %v75_v43  ;;  %v143_v57 = vmul.f32 %v142_v40, %v461_v36  ;;  %v101_v59 = vmul.f32 %v100_v47, %v449_v15  ;;  %v188_v1 = vld [vmem:[#allocation5 + $0x19] sm:$0x1]  ;;  %v146_v2 = vld [vmem:[#allocation5 + $0x12] sm:$0x1]  ;;  %v207_v3 = vld [vmem:[#allocation5 + $0x1c] sm:$0x1]  ;;  %v79_v6 = vadd.f32 %v78_v58, %v55_v45 }
  0x2a   :  { %159 = vst [vmem:[#allocation8 + $0x5] sm:$0x1] %v467_v48  ;;  %v474_v60 = vmul.f32 %v177_v17, %v156_v49  ;;  %v179_v61 = vmul.f32 %v178_v30, %v156_v49  ;;  %v140_v62 = vadd.f32 %v139_v51, %v117_v50  ;;  %v162_v63 = vmul.f32 %v161_v42, %v467_v48  ;;  %v169_v9 = vld [vmem:[#allocation5 + $0x16] sm:$0x1]  ;;  %v211_v13 = vld [vmem:[#allocation5 + $0x1d] sm:$0x1] }
  0x2b   :  { %v121_v4 = vadd.f32 %v120_v44, %v98_v56  ;;  %v166_v5 = vmul.f32 %v165_v52, %v467_v48  ;;  %v124_v7 = vmul.f32 %v123_v53, %v454_v23  ;;  %v58_v14 = vld [vmem:[#allocation5 + $0x3] sm:$0x1]  ;;  %v232_v16 = vld [vmem:[#allocation2 + $0x7] sm:$0x1]  ;;  %v102_v19 = vadd.f32 %v101_v59, %v79_v6  ;;  %v81_v21 = vld [vmem:[#allocation5 + $0x7] sm:$0x1] }
  0x2c   :  { %182 = vst [vmem:[#allocation8 + $0x6] sm:$0x1] %v474_v60  ;;  %v480_v10 = vmul.f32 %v200_v54, %v179_v61  ;;  %v163_v11 = vadd.f32 %v162_v63, %v140_v62  ;;  %v185_v12 = vmul.f32 %v184_v55, %v474_v60  ;;  %v189_v18 = vmul.f32 %v188_v1, %v474_v60  ;;  %v104_v22 = vld [vmem:[#allocation5 + $0xb] sm:$0x1]  ;;  %v192_v27 = vld [vmem:[#allocation5 + $0x1a] sm:$0x1] }
  0x2d   :  { %v144_v17 = vadd.f32 %v143_v57, %v121_v4  ;;  %v147_v20 = vmul.f32 %v146_v2, %v461_v36  ;;  %235 = vst [vmem:[#allocation8 + $0xf] sm:$0x1] %v232_v16  ;;  %v170_v26 = vmul.f32 %v169_v9, %v467_v48  ;;  %v204_v28 = vsub.f32 1.0, %v200_v54  ;;  %v215_v32 = vld [vmem:[#allocation5 + $0x1e] sm:$0x1]  ;;  %s293_s25 = sshll.u32 %s409_s24, 4  ;;  %s294_s25 = int_to_ptr.vmem [resolvable:$true] %s293_s25 }
  0x2e   :  { %203 = vst [vmem:[#allocation8 + $0x7] sm:$0x1] %v480_v10  ;;  %v186_v24 = vadd.f32 %v185_v12, %v163_v11  ;;  %v208_v25 = vmul.f32 %v207_v3, %v480_v10  ;;  %v212_v30 = vmul.f32 %v211_v13, %v480_v10  ;;  %v125_v31 = vadd.f32 %v124_v7, %v102_v19  ;;  %v127_v34 = vld [vmem:[#allocation5 + $0xf] sm:$0x1]  ;;  %v236_v39 = vld [vmem:[#allocation2 + $0x6] sm:$0x1] }
  0x2f   :  { %v167_v29 = vadd.f32 %v166_v5, %v144_v17  ;;  %v59_v33 = vmul.f32 %v58_v14, %v442_v0  ;;  %v82_v37 = vmul.f32 %v81_v21, %v446_v8  ;;  %v105_v38 = vmul.f32 %v104_v22, %v449_v15  ;;  %v150_v43 = vld [vmem:[#allocation5 + $0x13] sm:$0x1]  ;;  %v242_v44 = vld [vmem:[#allocation2 + $0x5] sm:$0x1]  ;;  %v248_v49 = vld [vmem:[#allocation2 + $0x4] sm:$0x1] }
  0x30   :  { %v209_v35 = vadd.f32 %v208_v25, %v186_v24  ;;  %v148_v41 = vadd.f32 %v147_v20, %v125_v31  ;;  %v193_v42 = vmul.f32 %v192_v27, %v474_v60  ;;  %v216_v45 = vmul.f32 %v215_v32, %v480_v10  ;;  %v173_v8 = vld [vmem:[#allocation5 + $0x17] sm:$0x1]  ;;  %v254_v57 = vld [vmem:[#allocation2 + $0x3] sm:$0x1]  ;;  %v260_v2 = vld [vmem:[#allocation2 + $0x2] sm:$0x1] }
  0x31   :  { %v190_v40 = vadd.f32 %v189_v18, %v167_v29  ;;  %v83_v46 = vadd.f32 %v82_v37, %v59_v33  ;;  %v128_v47 = vmul.f32 %v127_v34, %v454_v23  ;;  %v205_v0 = vmul.f32 %v204_v28, %v179_v61  ;;  %v196_v59 = vld [vmem:[#allocation5 + $0x1b] sm:$0x1]  ;;  %v219_v4 = vld [vmem:[#allocation5 + $0x1f] sm:$0x1]  ;;  %v266_v11 = vld [vmem:[#allocation2 + $0x1] sm:$0x1] }
  0x32   :  { %222 = vst [vmem:[#allocation7] sm:$0x1] %v209_v35  ;;  %v171_v51 = vadd.f32 %v170_v26, %v148_v41  ;;  %v233_v52 = vsub.f32 1.0, %v232_v16  ;;  %v237_v15 = vsub.f32 1.0, %v236_v39  ;;  %v151_v54 = vmul.f32 %v150_v43, %v461_v36  ;;  %v272_v24 = vld [vmem:[#allocation2] sm:$0x1] }
  0x33   :  { %v213_v50 = vadd.f32 %v212_v30, %v190_v40  ;;  %v106_v53 = vadd.f32 %v105_v38, %v83_v46  ;;  %v229_v55 = vsub.f32 1.0, %v205_v0  ;;  %v243_v56 = vsub.f32 1.0, %v242_v44  ;;  %s356_s26 = scalar_lea.vmem %s282_s1, 80  ;;  %s360_s27 = scalar_lea.vmem %s282_s1, 96 }
  0x34   :  { %v194_v58 = vadd.f32 %v193_v42, %v171_v51  ;;  %v239_v62 = vmul.f32 %v236_v39, %v233_v52  ;;  %v238_v63 = vmul.f32 %v237_v15, %v233_v52  ;;  %v249_v1 = vsub.f32 1.0, %v248_v49  ;;  %p357_p10 = scmp.ne.s32.totalorder %s282_s1, %s356_s26  ;;  %p362_p12 = scmp.lt.s32.totalorder %s360_s27, %s356_s26 }
  0x35   :  { %224 = vst [vmem:[#allocation7 + $0x1] sm:$0x1] %v213_v50  ;;  %v129_v23 = vadd.f32 %v128_v47, %v106_v53  ;;  %v174_v61 = vmul.f32 %v173_v8, %v467_v48  ;;  %231 = vst [vmem:[#allocation7 + $0x4] sm:$0x1] %v229_v55  ;;  %v255_v36 = vsub.f32 1.0, %v254_v57  ;;  %v197_v9 = vmul.f32 %v196_v59, %v474_v60 }
  0x36   :  { %v217_v3 = vadd.f32 %v216_v45, %v194_v58  ;;  %241 = vst [vmem:[#allocation8 + $0xe] sm:$0x1] %v239_v62  ;;  %v245_v5 = vmul.f32 %v242_v44, %v238_v63  ;;  %v244_v6 = vmul.f32 %v243_v56, %v238_v63  ;;  %v261_v14 = vsub.f32 1.0, %v260_v2  ;;  %p363_p13 = por %p362_p12, %p361_p11 }
  0x37   :  { %v152_v7 = vadd.f32 %v151_v54, %v129_v23  ;;  %v220_v48 = vmul.f32 %v219_v4, %v480_v10  ;;  %v267_v19 = vsub.f32 1.0, %v266_v11 }
  0x38   :  { %226 = vst [vmem:[#allocation7 + $0x2] sm:$0x1] %v217_v3  ;;  %247 = vst [vmem:[#allocation8 + $0xd] sm:$0x1] %v245_v5  ;;  %v251_v12 = vmul.f32 %v248_v49, %v244_v6  ;;  %v250_v13 = vmul.f32 %v249_v1, %v244_v6  ;;  %p364_p0 = pnand %p363_p13, %p357_p10 }
  0x39   :  { %v175_v16 = vadd.f32 %v174_v61, %v152_v7 }
  0x3a   :  { %253 = vst [vmem:[#allocation8 + $0xc] sm:$0x1] %v251_v12  ;;  %v257_v17 = vmul.f32 %v254_v57, %v250_v13  ;;  %v256_v18 = vmul.f32 %v255_v36, %v250_v13 }
  0x3b   :  { %v198_v20 = vadd.f32 %v197_v9, %v175_v16 }
  0x3c   :  { %259 = vst [vmem:[#allocation8 + $0xb] sm:$0x1] %v257_v17  ;;  %v263_v21 = vmul.f32 %v260_v2, %v256_v18  ;;  %v262_v22 = vmul.f32 %v261_v14, %v256_v18 }
  0x3d   :  { %v221_v60 = vadd.f32 %v220_v48, %v198_v20 }
  0x3e   :  { %265 = vst [vmem:[#allocation8 + $0xa] sm:$0x1] %v263_v21  ;;  %v269_v25 = vmul.f32 %v266_v11, %v262_v22  ;;  %v268_v26 = vmul.f32 %v267_v19, %v262_v22 }
  0x3f   :  { %228 = vst [vmem:[#allocation7 + $0x3] sm:$0x1] %v221_v60 }
  0x40   :  { %271 = vst [vmem:[#allocation8 + $0x9] sm:$0x1] %v269_v25  ;;  %v273_v10 = vmul.f32 %v272_v24, %v268_v26 }
  0x41   :  { %367 = shalt.err (!%p364_p0)
}
  0x42   :  { %287 = dma.vmem_to_hbm [thread:$0]  %s282_s1, 80, %s513_s2, [#allocation4], %s405_s15, %s405_s15, %s406_s16   ;;  %275 = vst [vmem:[#allocation8 + $0x8] sm:$0x1] %v273_v10 }
  0x43   :  { %s376_s30 = scalar_lea.vmem %s294_s25, 256  ;;  %p381_p2 = scmp.lt.s32.totalorder %s294_s25, %s294_s25 }
  0x44   :  { %p377_p1 = scmp.ne.s32.totalorder %s294_s25, %s376_s30  ;;  %p382_p3 = scmp.lt.s32.totalorder %s376_s30, %s376_s30 }
  0x46   :  { %p383_p4 = por %p382_p3, %p381_p2 }
  0x48   :  { %p384_p5 = pnand %p383_p4, %p377_p1 }
  0x4a   :  { %387 = shalt.err (!%p384_p5)
}
  0x4b   :  { %299 = dma.vmem_to_hbm [thread:$0]  %s294_s25, 256, %s514_s3, [#allocation9], %s405_s15, %s405_s15, %s406_s16  }
  0x4c   :  { %400 = dma.done.wait [#allocation4], 80  }
  0x4d   :  { %401 = vsyncadd [#allocation4], 4294967216 }
  0x4e   :  { %402 = dma.done.wait [#allocation9], 256  }
  0x4f   :  { %403 = vsyncadd [#allocation9], 4294967040 }
  0x50   :  { %306 = vsyncpa [#allocation3], 1 }
  0x51   :  { %307 = vsyncpa [#allocation6], 1 }
  0x52   :  { %308 = vsyncpa [#allocation4], 1 }
  0x53   :  { %309 = vsyncpa [#allocation9], 1 }

</bundles_post_ra>
